<compile_context>
chip_gen: v7x
topology: tpu7x:2x2x1
jax: 0.10.0
libtpu: 0.0.40
codegen_flags: <defaults>
</compile_context>

<pallas_src>
import functools
import math

import jax
import jax.numpy as jnp
from jax import lax
from jax.experimental import pallas as pl
from jax.experimental.pallas import tpu as pltpu


# --------------------------------------------------------------------------
# Tile-size helper
# --------------------------------------------------------------------------

def _pick_tile(dim, target, aligns=(128, 8)):
    """Largest divisor of `dim` <= target that is a multiple of one of `aligns`
    (tried in order), else the full dim (full-extent blocks are always legal)."""
    if dim <= target:
        return dim
    for align in aligns:
        t = (target // align) * align
        while t >= align:
            if dim % t == 0:
                return t
            t -= align
    # TODO(synk): for prime-ish dims switch to a pl.cdiv grid with in-kernel masking;
    # a full-extent f32 fallback tile can exceed v7x's 64 MiB VMEM for huge dims.
    return dim


# --------------------------------------------------------------------------
# Prep kernel: per-channel min/max statistics fused with the f32 -> bf16 cast.
# x is read from HBM exactly once; all downstream kernels stream the bf16 copy.
# --------------------------------------------------------------------------

def _prep_kernel(x_ref, xb_ref, mx_ref, mn_ref):
    x = x_ref[...]                              # [tm, tc] f32
    xb_ref[...] = x.astype(jnp.bfloat16)        # cast rides free under the DMA
    bmx = jnp.max(x, axis=0, keepdims=True)
    bmn = jnp.min(x, axis=0, keepdims=True)

    @pl.when(pl.program_id(1) == 0)
    def _():
        mx_ref[...] = bmx
        mn_ref[...] = bmn

    @pl.when(pl.program_id(1) > 0)
    def _():
        mx_ref[...] = jnp.maximum(mx_ref[...], bmx)
        mn_ref[...] = jnp.minimum(mn_ref[...], bmn)


def prep_stats_bf16_pallas(x2d, *, tm=512, tc=512):
    """x2d: [M, C] f32 -> (x_bf16 [M, C], cmx [C], cmn [C])."""
    M, C = x2d.shape
    tm = _pick_tile(M, tm, (8,))
    tc = _pick_tile(C, tc, (128, 8))
    grid = (C // tc, M // tm)                   # M innermost: running min/max reduction
    xb, cmx, cmn = pl.pallas_call(
        _prep_kernel,
        out_shape=(jax.ShapeDtypeStruct((M, C), jnp.bfloat16),
                   jax.ShapeDtypeStruct((1, C), x2d.dtype),
                   jax.ShapeDtypeStruct((1, C), x2d.dtype)),
        grid=grid,
        in_specs=[pl.BlockSpec((tm, tc), lambda ci, mi: (mi, ci))],
        out_specs=(pl.BlockSpec((tm, tc), lambda ci, mi: (mi, ci)),
                   pl.BlockSpec((1, tc), lambda ci, mi: (0, ci)),
                   pl.BlockSpec((1, tc), lambda ci, mi: (0, ci))),
        compiler_params=pltpu.CompilerParams(
            dimension_semantics=("parallel", "arbitrary")),
    )(x2d)
    return xb, cmx[0], cmn[0]


# --------------------------------------------------------------------------
# Tiled matmul:  out[M, O] = x[M, K] @ w_t[K, O]   (bf16 operands, f32 accumulator)
# --------------------------------------------------------------------------

def _matmul_kernel(x_ref, w_ref, o_ref, acc_ref):
    @pl.when(pl.program_id(2) == 0)
    def _():
        acc_ref[...] = jnp.zeros_like(acc_ref)

    acc_ref[...] += jnp.dot(x_ref[...], w_ref[...],
                            preferred_element_type=jnp.float32)

    @pl.when(pl.program_id(2) == pl.num_programs(2) - 1)
    def _():
        o_ref[...] = acc_ref[...].astype(o_ref.dtype)


def matmul_pallas(x_bf, w_t, *, tm=512, tn=512, tk=512, out_dtype=jnp.float32):
    """x_bf: [M, K] bf16, w_t: [K, O] bf16 (pre-transposed) -> [M, O] out_dtype."""
    M, K = x_bf.shape
    K2, O = w_t.shape
    assert K == K2
    tm = _pick_tile(M, tm, (128, 8))
    tn = _pick_tile(O, tn, (128, 8))
    tk = _pick_tile(K, tk, (128, 8))
    grid = (M // tm, O // tn, K // tk)
    return pl.pallas_call(
        _matmul_kernel,
        out_shape=jax.ShapeDtypeStruct((M, O), out_dtype),
        grid=grid,
        in_specs=[pl.BlockSpec((tm, tk), lambda i, j, k: (i, k)),
                  pl.BlockSpec((tk, tn), lambda i, j, k: (k, j))],
        out_specs=pl.BlockSpec((tm, tn), lambda i, j, k: (i, j)),
        scratch_shapes=[pltpu.VMEM((tm, tn), jnp.float32)],
        compiler_params=pltpu.CompilerParams(
            dimension_semantics=("parallel", "parallel", "arbitrary")),
    )(x_bf, w_t)


# --------------------------------------------------------------------------
# Fused q/k/v projection: one x tile feeds three MXU matmuls (three accumulators,
# three lane-dense bf16 outputs).  Grid (M, K); outputs resident across K.
# --------------------------------------------------------------------------

def _qkv_kernel(x_ref, wq_ref, wk_ref, wv_ref, q_ref, k_ref, v_ref,
                accq, acck, accv):
    @pl.when(pl.program_id(1) == 0)
    def _():
        accq[...] = jnp.zeros_like(accq)
        acck[...] = jnp.zeros_like(acck)
        accv[...] = jnp.zeros_like(accv)

    xb = x_ref[...]                              # bf16, loaded once for all three
    accq[...] += jnp.dot(xb, wq_ref[...], preferred_element_type=jnp.float32)
    acck[...] += jnp.dot(xb, wk_ref[...], preferred_element_type=jnp.float32)
    accv[...] += jnp.dot(xb, wv_ref[...], preferred_element_type=jnp.float32)

    @pl.when(pl.program_id(1) == pl.num_programs(1) - 1)
    def _():
        q_ref[...] = accq[...].astype(q_ref.dtype)
        k_ref[...] = acck[...].astype(k_ref.dtype)
        v_ref[...] = accv[...].astype(v_ref.dtype)


def qkv_proj_pallas(x_bf, wq_t, wk_t, wv_t, *, tm=256, tk=512):
    """x_bf: [M, K] bf16; wq_t: [K, Oq], wk_t/wv_t: [K, Okv] bf16 -> (q, k, v) bf16."""
    M, K = x_bf.shape
    Oq = wq_t.shape[1]
    Okv = wk_t.shape[1]
    assert wq_t.shape[0] == K and wk_t.shape == (K, Okv) and wv_t.shape == (K, Okv)
    tm = _pick_tile(M, tm, (128, 8))
    tk = _pick_tile(K, tk, (128, 8))
    grid = (M // tm, K // tk)
    return pl.pallas_call(
        _qkv_kernel,
        out_shape=(jax.ShapeDtypeStruct((M, Oq), jnp.bfloat16),
                   jax.ShapeDtypeStruct((M, Okv), jnp.bfloat16),
                   jax.ShapeDtypeStruct((M, Okv), jnp.bfloat16)),
        grid=grid,
        in_specs=[pl.BlockSpec((tm, tk), lambda i, k: (i, k)),
                  pl.BlockSpec((tk, Oq), lambda i, k: (k, 0)),
                  pl.BlockSpec((tk, Okv), lambda i, k: (k, 0)),
                  pl.BlockSpec((tk, Okv), lambda i, k: (k, 0))],
        out_specs=(pl.BlockSpec((tm, Oq), lambda i, k: (i, 0)),
                   pl.BlockSpec((tm, Okv), lambda i, k: (i, 0)),
                   pl.BlockSpec((tm, Okv), lambda i, k: (i, 0))),
        scratch_shapes=[pltpu.VMEM((tm, Oq), jnp.float32),
                        pltpu.VMEM((tm, Okv), jnp.float32),
                        pltpu.VMEM((tm, Okv), jnp.float32)],
        compiler_params=pltpu.CompilerParams(
            dimension_semantics=("parallel", "arbitrary"),
            vmem_limit_bytes=48 * 1024 * 1024),   # full-width accs: stay under v7x 64 MiB
    )(x_bf, wq_t, wk_t, wv_t)


# --------------------------------------------------------------------------
# Tiled SwiGLU up/gate:  silu(x @ Wg_t) * (x @ Wu_t), x tile shared by both matmuls
# --------------------------------------------------------------------------

def _up_gate_kernel(x_ref, wg_ref, wu_ref, o_ref, accg_ref, accu_ref):
    @pl.when(pl.program_id(2) == 0)
    def _():
        accg_ref[...] = jnp.zeros_like(accg_ref)
        accu_ref[...] = jnp.zeros_like(accu_ref)

    xb = x_ref[...]                              # bf16, loaded once, drives both matmuls
    accg_ref[...] += jnp.dot(xb, wg_ref[...], preferred_element_type=jnp.float32)
    accu_ref[...] += jnp.dot(xb, wu_ref[...], preferred_element_type=jnp.float32)

    @pl.when(pl.program_id(2) == pl.num_programs(2) - 1)
    def _():
        # silu epilogue rides the EUP/VPU slots while the MXU works on the next tile
        o_ref[...] = (jax.nn.silu(accg_ref[...]) * accu_ref[...]).astype(o_ref.dtype)


def up_gate_pallas(x_bf, wg_t, wu_t, *, tm=512, ti=512, tk=512):
    M, K = x_bf.shape
    K2, I = wg_t.shape
    assert K == K2 and wu_t.shape == (K, I)
    tm = _pick_tile(M, tm, (128, 8))
    ti = _pick_tile(I, ti, (128, 8))
    tk = _pick_tile(K, tk, (128, 8))
    grid = (M // tm, I // ti, K // tk)
    return pl.pallas_call(
        _up_gate_kernel,
        out_shape=jax.ShapeDtypeStruct((M, I), jnp.float32),
        grid=grid,
        in_specs=[pl.BlockSpec((tm, tk), lambda i, j, k: (i, k)),
                  pl.BlockSpec((tk, ti), lambda i, j, k: (k, j)),
                  pl.BlockSpec((tk, ti), lambda i, j, k: (k, j))],
        out_specs=pl.BlockSpec((tm, ti), lambda i, j, k: (i, j)),
        scratch_shapes=[pltpu.VMEM((tm, ti), jnp.float32),
                        pltpu.VMEM((tm, ti), jnp.float32)],
        compiler_params=pltpu.CompilerParams(
            dimension_semantics=("parallel", "parallel", "arbitrary")),
    )(x_bf, wg_t, wu_t)


# --------------------------------------------------------------------------
# Flash attention (causal, GQA-grouped Q blocks, online softmax, clamped KV DMA)
# --------------------------------------------------------------------------

def _flash_kernel(q_ref, k_ref, v_ref, o_ref, m_sc, l_sc, acc_sc, *, tq, tkv, groups):
    qi = pl.program_id(2)
    ki = pl.program_id(3)
    nk = pl.num_programs(3)

    @pl.when(ki == 0)
    def _():
        m_sc[...] = jnp.full(m_sc.shape, -1e30, dtype=m_sc.dtype)
        l_sc[...] = jnp.zeros_like(l_sc)
        acc_sc[...] = jnp.zeros_like(acc_sc)

    # Skip KV blocks that lie entirely above the causal diagonal (their DMA is also
    # suppressed by the clamped index_map in the wrapper).
    @pl.when(qi * tq + (tq - 1) >= ki * tkv)
    def _():
        k = k_ref[0, 0]                            # [tkv, D] bf16 — shared by the group
        v = v_ref[0, 0]                            # [tkv, D] bf16
        row = qi * tq + lax.broadcasted_iota(jnp.int32, (tq, tkv), 0)
        col = ki * tkv + lax.broadcasted_iota(jnp.int32, (tq, tkv), 1)
        causal = row >= col                        # mask computed once per (qi, ki)

        for g in range(groups):                    # static unroll over the GQA group
            q = q_ref[0, g]                        # [tq, D] bf16, pre-scaled by 1/sqrt(D)
            s = lax.dot_general(q, k, (((1,), (1,)), ((), ())),
                                preferred_element_type=jnp.float32)   # [tq, tkv]
            s = jnp.where(causal, s, -1e30)

            m_prev = m_sc[g]
            m_new = jnp.maximum(m_prev, jnp.max(s, axis=-1, keepdims=True))
            alpha = jnp.exp(m_prev - m_new)
            p = jnp.exp(s - m_new)
            l_sc[g] = alpha * l_sc[g] + jnp.sum(p, axis=-1, keepdims=True)
            acc_sc[g] = alpha * acc_sc[g] + lax.dot_general(
                p.astype(jnp.bfloat16), v, (((1,), (0,)), ((), ())),
                preferred_element_type=jnp.float32)
            m_sc[g] = m_new

    @pl.when(ki == nk - 1)
    def _():
        for g in range(groups):
            o_ref[0, g] = (acc_sc[g] * pl.reciprocal(l_sc[g], approx=True)
                           ).astype(o_ref.dtype)


def flash_attention_pallas(q, k, v, groups, *, tq=256, tkv=256):
    """q: [B, H, N, D] (pre-scaled), k/v: [B, H//groups, N, D] (un-repeated GQA)."""
    B, H, N, D = q.shape
    nkv = H // groups
    assert H == nkv * groups and k.shape == (B, nkv, N, D) and v.shape == k.shape
    q = q.astype(jnp.bfloat16)
    k = k.astype(jnp.bfloat16)
    v = v.astype(jnp.bfloat16)

    tq = _pick_tile(N, tq, (128, 8))
    tkv = _pick_tile(N, tkv, (128, 8))
    grid = (B, nkv, N // tq, N // tkv)

    def q_map(b, h, qi, ki):
        return (b, h, qi, 0)

    def kv_map(b, h, qi, ki):
        # Clamp to the causal upper bound: masked blocks repeat the previous block
        # index so Pallas skips their DMA entirely.
        last = (qi * tq + tq - 1) // tkv
        return (b, h, jnp.minimum(ki, last), 0)

    kernel = functools.partial(_flash_kernel, tq=tq, tkv=tkv, groups=groups)
    # TODO(synk): if head_dim < 128, lane-pack two heads per block for dense vregs.
    return pl.pallas_call(
        kernel,
        out_shape=jax.ShapeDtypeStruct((B, H, N, D), jnp.float32),
        grid=grid,
        in_specs=[
            pl.BlockSpec((1, groups, tq, D), q_map),      # whole GQA group per block
            pl.BlockSpec((1, 1, tkv, D), kv_map),         # KV tile fetched once / group
            pl.BlockSpec((1, 1, tkv, D), kv_map),
        ],
        out_specs=pl.BlockSpec((1, groups, tq, D), q_map),
        scratch_shapes=[pltpu.VMEM((groups, tq, 1), jnp.float32),   # running max
                        pltpu.VMEM((groups, tq, 1), jnp.float32),   # running denom
                        pltpu.VMEM((groups, tq, D), jnp.float32)],  # output accumulator
        compiler_params=pltpu.CompilerParams(
            dimension_semantics=("parallel", "parallel", "parallel", "arbitrary")),
    )(q, k, v)


# --------------------------------------------------------------------------
# Glue (RoPE tables, reshapes) — plain JAX
# --------------------------------------------------------------------------

def _rotary_tables(seq_len, head_dim, theta=10000.0):
    inv_freq = 1.0 / (theta ** (jnp.arange(0, head_dim, 2, dtype=jnp.float32) / head_dim))
    pos = jnp.arange(seq_len, dtype=jnp.float32)
    freqs = pos[:, None] * inv_freq[None, :]              # [N, D/2]
    emb = jnp.concatenate([freqs, freqs], axis=-1)        # [N, D]
    return jnp.cos(emb), jnp.sin(emb)


def _rotate_half(x):
    half = x.shape[-1] // 2
    return jnp.concatenate([-x[..., half:], x[..., :half]], axis=-1)


def _rope_and_scale(q, k, cos, sin, scale):
    """RoPE (HF apply_rotary_pos_emb) + fold 1/sqrt(D) into q; emit bf16."""
    cos = cos[None, None, :, :]
    sin = sin[None, None, :, :]
    q_out = ((q * cos + _rotate_half(q) * sin) * scale).astype(jnp.bfloat16)
    k_out = (k * cos + _rotate_half(k) * sin).astype(jnp.bfloat16)
    return q_out, k_out


def _causal_mask(B, N):
    tri = jnp.tril(jnp.ones((N, N), dtype=bool))
    m = jnp.where(tri, 0.0, -1e30).astype(jnp.float32)
    return jnp.broadcast_to(m[None, None, :, :], (B, 1, N, N))


# --------------------------------------------------------------------------
# MigratorBase (forward-path semantics)
# --------------------------------------------------------------------------

class MigratorBase:
    def __init__(self, input, weight, module_type, extra_dict=None):
        self.input = input            # [B, N, C_in]
        self.weight = weight          # [C_out, C_in]
        self.module_type = module_type
        self.extra_dict = extra_dict
        self.dtype = input.dtype

        B, N, C = input.shape
        # Per-channel min/max stats fused with the f32->bf16 cast: x is read from HBM
        # exactly once here; downstream kernels stream the bf16 copy.
        x_bf16, cmx, cmn = prep_stats_bf16_pallas(input.reshape(B * N, C))
        self._x2d_bf16 = x_bf16
        self.cmx, self.cmn = cmx, cmn
        self.amx = jnp.maximum(jnp.max(cmx), jnp.float32(0.0))
        self.amn = jnp.minimum(jnp.min(cmn), jnp.float32(0.0))

        self.output = self.get_output(input, weight)
        # TODO(synk): MinMaxObserver / fake-quant scale search (aob, wob, quantize,
        # get_qoutput, cac_loss) are calibration utilities outside the forward hot path.

    # ---- dispatch (mirrors get_output) ----
    def get_output(self, input, weight):
        B, N, C = input.shape
        if input is self.input:
            x2d = self._x2d_bf16
        else:
            x2d = input.reshape(B * N, C).astype(jnp.bfloat16)
        if self.module_type == 'qkv':
            return self.qkv_function(x2d, weight, B, N, C)
        elif self.module_type == 'up_and_gate':
            return self.up_function(x2d, weight, B, N)
        elif self.module_type == 'down_proj':
            return self.down_function(x2d, weight, B, N)
        else:
            raise NotImplementedError

    # ---- qkv path ----
    def qkv_function(self, x2d_bf, weight, B, N, C):
        hd = self.extra_dict['head_dim']
        nh = self.extra_dict['num_heads']
        nkv = self.extra_dict['num_key_value_heads']
        groups = self.extra_dict['num_key_value_groups']
        sz_q, sz_kv = nh * hd, nkv * hd
        assert nh * hd == C, "qkv path assumes num_heads * head_dim == hidden (Llama)"

        # One-time weight layout fix (hoisted out of the kernels): [O,K] -> [K,O] bf16.
        wq_t = weight[:sz_q].T.astype(jnp.bfloat16)
        wk_t = weight[sz_q:sz_q + sz_kv].T.astype(jnp.bfloat16)
        wv_t = weight[sz_q + sz_kv:].T.astype(jnp.bfloat16)

        # Fused projection: x tile shared across three MXU matmuls, bf16 q/k/v out.
        q2d, k2d, v2d = qkv_proj_pallas(x2d_bf, wq_t, wk_t, wv_t)
        q = q2d.reshape(B, N, nh, hd).transpose(0, 2, 1, 3)
        k = k2d.reshape(B, N, nkv, hd).transpose(0, 2, 1, 3)
        v = v2d.reshape(B, N, nkv, hd).transpose(0, 2, 1, 3)

        cos, sin = _rotary_tables(N, hd)
        q, k = _rope_and_scale(q, k, cos, sin, 1.0 / math.sqrt(hd))

        # past_key_value is None in this synthetic setup (no KV cache concat).
        # GQA: no jnp.repeat — the attention kernel blocks `groups` Q heads per KV head.
        # TODO(synk): arbitrary additive attention masks (padding) are not plumbed into
        # the flash kernel; it generates the standard causal mask in-kernel.
        attn = flash_attention_pallas(q, k, v, groups)          # [B, H, N, hd] f32
        attn = attn.transpose(0, 2, 1, 3).reshape(B, N, C)
        return attn.astype(jnp.float32)

    # ---- up_and_gate path (SwiGLU) ----
    def up_function(self, x2d_bf, weight, B, N):
        Cout = weight.shape[0]
        half = Cout // 2
        wg_t = weight[:half].T.astype(jnp.bfloat16)     # [K, I]
        wu_t = weight[half:].T.astype(jnp.bfloat16)     # [K, I]
        out = up_gate_pallas(x2d_bf, wg_t, wu_t)
        return out.reshape(B, N, half).astype(jnp.float32)

    # ---- down_proj path ----
    def down_function(self, x2d_bf, weight, B, N):
        w_t = weight.T.astype(jnp.bfloat16)             # [K, O]
        out = matmul_pallas(x2d_bf, w_t)
        return out.reshape(B, N, weight.shape[0]).astype(jnp.float32)

    def forward(self):
        pass


# --------------------------------------------------------------------------
# Pure-JAX references (sanity check)
# --------------------------------------------------------------------------

def _ref_linear(x, w):
    return jnp.einsum('bnk,ok->bno', x, w)


def _ref_qkv(x, w, extra):
    B, N, C = x.shape
    hd, nh, nkv = extra['head_dim'], extra['num_heads'], extra['num_key_value_heads']
    sz_q, sz_kv = nh * hd, nkv * hd
    qkv = _ref_linear(x, w)
    q = qkv[:, :, :sz_q].reshape(B, N, nh, hd).transpose(0, 2, 1, 3)
    k = qkv[:, :, sz_q:sz_q + sz_kv].reshape(B, N, nkv, hd).transpose(0, 2, 1, 3)
    v = qkv[:, :, sz_q + sz_kv:].reshape(B, N, nkv, hd).transpose(0, 2, 1, 3)
    cos, sin = _rotary_tables(N, hd)
    cos, sin = cos[None, None], sin[None, None]
    q = q * cos + _rotate_half(q) * sin
    k = k * cos + _rotate_half(k) * sin
    k = jnp.repeat(k, extra['num_key_value_groups'], axis=1)
    v = jnp.repeat(v, extra['num_key_value_groups'], axis=1)
    s = jnp.einsum('bhqd,bhkd->bhqk', q, k) / math.sqrt(hd) + extra['attention_mask']
    p = jax.nn.softmax(s, axis=-1)
    o = jnp.einsum('bhqk,bhkd->bhqd', p, v)
    return o.transpose(0, 2, 1, 3).reshape(B, N, C)


def _ref_up(x, w):
    Cout = w.shape[0]
    y = _ref_linear(x, w)
    gate, up = y[..., :Cout // 2], y[..., Cout // 2:]
    return jax.nn.silu(gate) * up


# --------------------------------------------------------------------------

if __name__ == "__main__":
    key = jax.random.PRNGKey(0)
    k_x, k_wqkv, k_wug, k_wdn, k_xd = jax.random.split(key, 5)

    B, N, C = 2, 8, 32
    num_heads, head_dim, num_kv_heads = 4, 8, 2
    groups = num_heads // num_kv_heads
    intermediate = 64

    x = jax.random.normal(k_x, (B, N, C), dtype=jnp.float32)
    w_qkv = jax.random.normal(k_wqkv, ((num_heads + 2 * num_kv_heads) * head_dim, C),
                              dtype=jnp.float32) * 0.05
    w_up_gate = jax.random.normal(k_wug, (2 * intermediate, C), dtype=jnp.float32) * 0.05
    x_down = jax.random.normal(k_xd, (B, N, intermediate), dtype=jnp.float32)
    w_down = jax.random.normal(k_wdn, (C, intermediate), dtype=jnp.float32) * 0.05

    extra = {
        'head_dim': head_dim,
        'num_heads': num_heads,
        'num_key_value_heads': num_kv_heads,
        'num_key_value_groups': groups,
        'past_key_value': None,
        'attention_mask': _causal_mask(B, N),   # reference-only; kernel builds it in-kernel
        'cache_position': jnp.arange(N),
        'position_ids': jnp.broadcast_to(jnp.arange(N)[None, :], (B, N)),
    }

    # qkv path
    m_qkv = MigratorBase(x, w_qkv, 'qkv', extra)
    out_qkv = jax.block_until_ready(m_qkv.output)
    # up_and_gate path
    m_up = MigratorBase(x, w_up_gate, 'up_and_gate', extra)
    out_up = jax.block_until_ready(m_up.output)
    # down_proj path
    m_dn = MigratorBase(x_down, w_down, 'down_proj', extra)
    out_dn = jax.block_until_ready(m_dn.output)

    # sanity checks vs pure-JAX f32 references (tolerance covers bf16 activation /
    # weight streaming and the approx-reciprocal softmax denominator)
    assert jnp.allclose(out_qkv, _ref_qkv(x, w_qkv, extra), atol=2e-2, rtol=2e-2)
    assert jnp.allclose(out_up, _ref_up(x, w_up_gate), atol=2e-2, rtol=2e-2)
    assert jnp.allclose(out_dn, _ref_linear(x_down, w_down), atol=2e-2, rtol=2e-2)
    assert jnp.allclose(m_qkv.cmx, jnp.max(x, axis=(0, 1)), atol=1e-6)
    assert jnp.allclose(m_qkv.cmn, jnp.min(x, axis=(0, 1)), atol=1e-6)

    print("KERNEL_OK")
</pallas_src>

<mosaic_0001>
module attributes {stable_mosaic.version = 11 : i64} {
  func.func @_prep_kernel(%arg0: i32, %arg1: i32, %arg2: memref<16x32xf32, #tpu.memory_space<vmem>>, %arg3: memref<16x32xbf16, #tpu.memory_space<vmem>>, %arg4: memref<1x32xf32, #tpu.memory_space<vmem>>, %arg5: memref<1x32xf32, #tpu.memory_space<vmem>>) attributes {dimension_semantics = [#tpu.dimension_semantics<parallel>, #tpu.dimension_semantics<arbitrary>], iteration_bounds = array<i64: 1, 1>, scalar_prefetch = 0 : i64, scratch_operands = 0 : i64, tpu.core_type = #tpu.core_type<tc>, window_params = [{transform_indices = @transform_0, window_bounds = array<i64: 16, 32>}, {transform_indices = @transform_1, window_bounds = array<i64: 16, 32>}, {transform_indices = @transform_2, window_bounds = array<i64: 1, 32>}, {transform_indices = @transform_3, window_bounds = array<i64: 1, 32>}]} {
    %c0 = arith.constant 0 : index
    %c0_0 = arith.constant 0 : index
    %0 = vector.load %arg2[%c0, %c0_0] : memref<16x32xf32, #tpu.memory_space<vmem>>, vector<16x32xf32>
    %1 = arith.truncf %0 : vector<16x32xf32> to vector<16x32xbf16>
    %c0_1 = arith.constant 0 : index
    %c0_2 = arith.constant 0 : index
    %2 = vector.load %arg3[%c0_1, %c0_2] : memref<16x32xbf16, #tpu.memory_space<vmem>>, vector<16x32xbf16>
    tpu.vector_store %arg3[%c0_1, %c0_2], %1 {strides = array<i32>} : memref<16x32xbf16, #tpu.memory_space<vmem>>, vector<16x32xbf16>,
    %cst = arith.constant dense<0xFF800000> : vector<32xf32>
    %3 = vector.multi_reduction <maximumf>, %0, %cst [0] : vector<16x32xf32> to vector<32xf32>
    %4 = vector.shape_cast %3 : vector<32xf32> to vector<1x32xf32>
    %cst_3 = arith.constant dense<0x7F800000> : vector<32xf32>
    %5 = vector.multi_reduction <minimumf>, %0, %cst_3 [0] : vector<16x32xf32> to vector<32xf32>
    %6 = vector.shape_cast %5 : vector<32xf32> to vector<1x32xf32>
    %c0_i32 = arith.constant 0 : i32
    %7 = arith.cmpi eq, %arg1, %c0_i32 : i32
    %8 = arith.extui %7 : i1 to i32
    %c0_i32_4 = arith.constant 0 : i32
    %9 = arith.cmpi ne, %8, %c0_i32_4 : i32
    scf.if %9 {
      %c0_7 = arith.constant 0 : index
      %c0_8 = arith.constant 0 : index
      %13 = vector.load %arg4[%c0_7, %c0_8] : memref<1x32xf32, #tpu.memory_space<vmem>>, vector<1x32xf32>
      tpu.vector_store %arg4[%c0_7, %c0_8], %4 {strides = array<i32>} : memref<1x32xf32, #tpu.memory_space<vmem>>, vector<1x32xf32>,
      %c0_9 = arith.constant 0 : index
      %c0_10 = arith.constant 0 : index
      %14 = vector.load %arg5[%c0_9, %c0_10] : memref<1x32xf32, #tpu.memory_space<vmem>>, vector<1x32xf32>
      tpu.vector_store %arg5[%c0_9, %c0_10], %6 {strides = array<i32>} : memref<1x32xf32, #tpu.memory_space<vmem>>, vector<1x32xf32>,
    } else {
    }
    %c0_i32_5 = arith.constant 0 : i32
    %10 = arith.cmpi sgt, %arg1, %c0_i32_5 : i32
    %11 = arith.extui %10 : i1 to i32
    %c0_i32_6 = arith.constant 0 : i32
    %12 = arith.cmpi ne, %11, %c0_i32_6 : i32
    scf.if %12 {
      %c0_7 = arith.constant 0 : index
      %c0_8 = arith.constant 0 : index
      %13 = vector.load %arg4[%c0_7, %c0_8] : memref<1x32xf32, #tpu.memory_space<vmem>>, vector<1x32xf32>
      %14 = arith.maximumf %13, %4 : vector<1x32xf32>
      %c0_9 = arith.constant 0 : index
      %c0_10 = arith.constant 0 : index
      %15 = vector.load %arg4[%c0_9, %c0_10] : memref<1x32xf32, #tpu.memory_space<vmem>>, vector<1x32xf32>
      tpu.vector_store %arg4[%c0_9, %c0_10], %14 {strides = array<i32>} : memref<1x32xf32, #tpu.memory_space<vmem>>, vector<1x32xf32>,
      %c0_11 = arith.constant 0 : index
      %c0_12 = arith.constant 0 : index
      %16 = vector.load %arg5[%c0_11, %c0_12] : memref<1x32xf32, #tpu.memory_space<vmem>>, vector<1x32xf32>
      %17 = arith.minimumf %16, %6 : vector<1x32xf32>
      %c0_13 = arith.constant 0 : index
      %c0_14 = arith.constant 0 : index
      %18 = vector.load %arg5[%c0_13, %c0_14] : memref<1x32xf32, #tpu.memory_space<vmem>>, vector<1x32xf32>
      tpu.vector_store %arg5[%c0_13, %c0_14], %17 {strides = array<i32>} : memref<1x32xf32, #tpu.memory_space<vmem>>, vector<1x32xf32>,
    } else {
    }
    return
  }
  func.func @transform_0(%arg0: i32, %arg1: i32) -> (i32, i32) {
    %c0_i32 = arith.constant 0 : i32
    return %arg1, %arg0 : i32, i32
  }
  func.func @transform_1(%arg0: i32, %arg1: i32) -> (i32, i32) {
    %c0_i32 = arith.constant 0 : i32
    return %arg1, %arg0 : i32, i32
  }
  func.func @transform_2(%arg0: i32, %arg1: i32) -> (i32, i32) {
    %c0_i32 = arith.constant 0 : i32
    %c0_i32_0 = arith.constant 0 : i32
    return %c0_i32, %arg0 : i32, i32
  }
  func.func @transform_3(%arg0: i32, %arg1: i32) -> (i32, i32) {
    %c0_i32 = arith.constant 0 : i32
    %c0_i32_0 = arith.constant 0 : i32
    return %c0_i32, %arg0 : i32, i32
  }
}

</mosaic_0001>

<bundles_post_ra>
// kernel: tpu_custom_call.1
= control target key start
LH: loop header
LB: loop body
LE: loop exit
PB: predicated region body
PF: predicated region fallthrough
CT: control target
= control target key end

     0   :  { %9 = vsyncpa [#allocation3], 0  ;;  %s318_s0 = inlined_call_operand.hbm [shape: f32[16,32], index: 0, kind: input, shape index: {}]   ;;  %s319_s1 = inlined_call_operand.hbm [shape: bf16[16,32], index: 1, kind: output, shape index: {0}]   ;;  %s320_s2 = inlined_call_operand.hbm [shape: f32[1,32], index: 2, kind: output, shape index: {1}]   ;;  %s321_s3 = inlined_call_operand.hbm [shape: f32[1,32], index: 3, kind: output, shape index: {2}]  }
   0x1   :  { %10 = vsyncpa [#allocation4], 0 }
   0x2   :  { %11 = vsyncpa [#allocation7], 0  ;;  %s227_s12 = smov [#allocation2]   ;;  %s133_s16 = scalar_lea.hbm %s318_s0, 256 }
   0x3   :  { %s17_s13 = sshll.u32 %s227_s12, 4  ;;  %p134_p0 = scmp.ne.s32.totalorder %s318_s0, %s133_s16  ;;  %s18_s13 = int_to_ptr.vmem [resolvable:$true] %s17_s13 }
   0x4   :  { %p137_p1 = scmp.lt.u32.totalorder %s133_s16, %s318_s0 }
   0x6   :  { %p139_p2 = pnand %p137_p1, %p134_p0 }
   0x8   :  { %142 = shalt.err (!%p139_p2)
}
   0x9   :  { %s143_s21 = scalar_lea.vmem %s18_s13, 256  ;;  %p148_p4 = scmp.lt.s32.totalorder %s18_s13, %s18_s13 }
   0xa   :  { %p144_p3 = scmp.ne.s32.totalorder %s18_s13, %s143_s21  ;;  %p149_p5 = scmp.lt.s32.totalorder %s143_s21, %s143_s21 }
   0xc   :  { %p150_p6 = por %p149_p5, %p148_p4 }
   0xe   :  { %p151_p7 = pnand %p150_p6, %p144_p3 }
  0x10   :  { %154 = shalt.err (!%p151_p7)
}
  0x11   :  { %s228_s22 = smov 128   ;;  %s229_s23 = smov 8  }
  0x12   :  { %23 = dma.hbm_to_vmem [thread:$0]  %s318_s0, 256, %s18_s13, [#allocation3], %s228_s22, %s228_s22, %s229_s23  }
  0x13   :  { %221 = dma.done.wait [#allocation3], 256  }
  0x14   :  { %222 = vsyncadd [#allocation3], 4294967040  ;;  %s230_s26 = smov [#allocation5]   ;;  %vm40_vm0 = vcmask 261120   ;;  %v27_v0 = vld [vmem:[#allocation2] sm:$0xff]  ;;  %v28_v1 = vld [vmem:[#allocation2 + $0x8] sm:$0xff] }
  0x15   :  { %s82_s27 = sshll.u32 %s230_s26, 4  ;;  %vm37_vm1 = vcmask 257024   ;;  %v41_v2 = vsel %vm40_vm0, %v27_v0, -inf  ;;  %v42_v3 = vsel %vm40_vm0, %v28_v1, -inf  ;;  %v123_v4 = vpack.c.bf16 %v27_v0, %v27_v0  ;;  %s267_s27 = int_to_ptr.vmem [resolvable:$true] %s82_s27 }
  0x16   :  { %v124_v5 = vpack.c.bf16 %v28_v1, %v28_v1  ;;  %v43_v6 = vmax.f32 %v41_v2, %v42_v3  ;;  %v50_v7 = vsel %vm40_vm0, %v27_v0, inf  ;;  %v51_v8 = vsel %vm40_vm0, %v28_v1, inf  ;;  %s155_s0 = scalar_lea.vmem %s267_s27, 128  ;;  %p160_p9 = scmp.lt.s32.totalorder %s267_s27, %s267_s27 }
  0x17   :  { %38 = vst.msk [vmem:[#allocation5] sm:$0xf] %vm37_vm1, %v123_v4  ;;  %v52_v9 = vmin.f32 %v50_v7, %v51_v8  ;;  %p156_p8 = scmp.ne.s32.totalorder %s267_s27, %s155_s0  ;;  %p161_p10 = scmp.lt.s32.totalorder %s155_s0, %s155_s0 }
  0x18   :  { %39 = vst.msk [vmem:[#allocation5 + $0x4] sm:$0xf] %vm37_vm1, %v124_v5  ;;  %v44_v10 = vrot.slane %v43_v6, 4 }
  0x19   :  { %p162_p11 = por %p161_p10, %p160_p9 }
  0x1b   :  { %p163_p12 = pnand %p162_p11, %p156_p8 }
  0x1d   :  { %166 = shalt.err (!%p163_p12)
}
  0x1e   :  { %s167_s30 = scalar_lea.hbm %s319_s1, 128 }
  0x1f   :  { %p168_p13 = scmp.ne.s32.totalorder %s319_s1, %s167_s30  ;;  %p171_p0 = scmp.lt.u32.totalorder %s167_s30, %s319_s1 }
  0x21   :  { %p173_p1 = pnand %p171_p0, %p168_p13 }
  0x23   :  { %176 = shalt.err (!%p173_p1)
}
  0x24   :  { %s231_s8 = smov 64   ;;  %s232_s9 = smov 4   ;;  %v53_v11 = vrot.slane %v52_v9, 4  ;;  %v45_v12 = vmax.f32 %v43_v6, %v44_v10  ;;  %vm63_vm2 = vcmask 253952  }
  0x25   :  { %88 = dma.vmem_to_hbm [thread:$0]  %s267_s27, 128, %s319_s1, [#allocation4], %s231_s8, %s231_s8, %s232_s9  }
  0x26   :  { %v54_v13 = vmin.f32 %v52_v9, %v53_v11  ;;  %v46_v14 = vrot.slane %v45_v12, 2  ;;  %s233_s12 = smov [#allocation6]   ;;  %s234_s14 = smov [#allocation8]  }
  0x27   :  { %s95_s13 = sshll.u32 %s233_s12, 4  ;;  %s105_s15 = sshll.u32 %s234_s14, 4  ;;  %s96_s13 = int_to_ptr.vmem [resolvable:$true] %s95_s13  ;;  %s286_s15 = int_to_ptr.vmem [resolvable:$true] %s105_s15 }
  0x28   :  { %v55_v15 = vrot.slane %v54_v13, 2  ;;  %v47_v16 = vmax.f32 %v45_v12, %v46_v14  ;;  %s177_s1 = scalar_lea.vmem %s96_s13, 16  ;;  %s181_s16 = scalar_lea.vmem %s96_s13, 32 }
  0x29   :  { %p178_p2 = scmp.ne.s32.totalorder %s96_s13, %s177_s1  ;;  %p182_p3 = scmp.lt.s32.totalorder %s96_s13, %s96_s13 }
  0x2a   :  { %v56_v17 = vmin.f32 %v54_v13, %v55_v15  ;;  %v48_v18 = vrot.slane %v47_v16, 1  ;;  %p183_p4 = scmp.lt.s32.totalorder %s181_s16, %s177_s1 }
  0x2c   :  { %v57_v19 = vrot.slane %v56_v17, 1  ;;  %v49_v20 = vmax.f32 %v47_v16, %v48_v18  ;;  %p184_p5 = por %p183_p4, %p182_p3 }
  0x2e   :  { %v58_v21 = vmin.f32 %v56_v17, %v57_v19  ;;  %64 = vst.msk [vmem:[#allocation6] sm:$0x1] %vm63_vm2, %v49_v20  ;;  %p185_p6 = pnand %p184_p5, %p178_p2 }
  0x30   :  { %65 = vst.msk [vmem:[#allocation8] sm:$0x1] %vm63_vm2, %v58_v21 }
  0x31   :  { %188 = shalt.err (!%p185_p6)
}
  0x32   :  { %s189_s19 = scalar_lea.hbm %s320_s2, 16 }
  0x33   :  { %p190_p7 = scmp.ne.s32.totalorder %s320_s2, %s189_s19  ;;  %p193_p8 = scmp.lt.u32.totalorder %s189_s19, %s320_s2 }
  0x35   :  { %p195_p9 = pnand %p193_p8, %p190_p7 }
  0x37   :  { %198 = shalt.err (!%p195_p9)
}
  0x38   :  { %98 = dma.vmem_to_hbm [thread:$0]  %s96_s13, 16, %s320_s2, [#allocation7]  }
  0x39   :  { %s199_s26 = scalar_lea.vmem %s286_s15, 16  ;;  %s203_s27 = scalar_lea.vmem %s286_s15, 32 }
  0x3a   :  { %p200_p10 = scmp.ne.s32.totalorder %s286_s15, %s199_s26  ;;  %p204_p11 = scmp.lt.s32.totalorder %s286_s15, %s286_s15 }
  0x3b   :  { %p205_p12 = scmp.lt.s32.totalorder %s203_s27, %s199_s26 }
  0x3d   :  { %p206_p13 = por %p205_p12, %p204_p11 }
  0x3f   :  { %p207_p0 = pnand %p206_p13, %p200_p10 }
  0x41   :  { %210 = shalt.err (!%p207_p0)
}
  0x42   :  { %s211_s29 = scalar_lea.hbm %s321_s3, 16 }
  0x43   :  { %p212_p1 = scmp.ne.s32.totalorder %s321_s3, %s211_s29  ;;  %p215_p2 = scmp.lt.u32.totalorder %s211_s29, %s321_s3 }
  0x45   :  { %p217_p3 = pnand %p215_p2, %p212_p1 }
  0x47   :  { %220 = shalt.err (!%p217_p3)
}
  0x48   :  { %108 = dma.vmem_to_hbm [thread:$0]  %s286_s15, 16, %s321_s3, [#allocation7]  }
  0x49   :  { %223 = dma.done.wait [#allocation4], 128  }
  0x4a   :  { %224 = vsyncadd [#allocation4], 4294967168 }
  0x4b   :  { %225 = dma.done.wait [#allocation7], 32  }
  0x4c   :  { %226 = vsyncadd [#allocation7], 4294967264 }
  0x4d   :  { %118 = vsyncpa [#allocation3], 1 }
  0x4e   :  { %119 = vsyncpa [#allocation4], 1 }
  0x4f   :  { %120 = vsyncpa [#allocation7], 1 }

</bundles_post_ra>
